<compile_context>
chip_gen: v5e
topology: v5e:2x2
jax: 0.10.0
libtpu: 0.0.40
codegen_flags: <defaults>
</compile_context>

<pallas_src>
import jax
import jax.numpy as jnp
from jax.experimental import pallas as pl
from jax.experimental.pallas import tpu as pltpu


def _round_up(x, m):
    return ((x + m - 1) // m) * m


# ------------------------------ Pallas kernel ------------------------------

def patch_linear_kernel(a_ref, w_ref, b_ref, o_ref):
    # a: (tm, Kp) bf16 (streamed), w: (Kp, Dp) bf16 (resident),
    # b: (1, Dp) f32 (resident)  ->  o: (tm, Dp) bf16.
    # f32 accumulation on the MXU, bias add fused, single cast in epilogue.
    acc = jnp.dot(a_ref[...], w_ref[...], preferred_element_type=jnp.float32)
    o_ref[...] = (acc + b_ref[...]).astype(o_ref.dtype)


def fused_patch_linear(a, w, bias, *, tm, out_dtype=jnp.bfloat16):
    """o = a @ w + bias with a resident full-N weight.

    Pre-padded shapes: M % tm == 0, K % 128 == 0, N % 256 == 0.
    a/w are bf16 (MXU-native); bias is f32; output is `out_dtype`.
    """
    M, K = a.shape
    N = w.shape[1]
    out_bytes = jnp.dtype(out_dtype).itemsize
    cost = pl.CostEstimate(
        flops=2 * M * K * N,
        transcendentals=0,
        bytes_accessed=M * K * 2 + K * N * 2 + N * 4 + M * N * out_bytes,
    )
    return pl.pallas_call(
        patch_linear_kernel,
        out_shape=jax.ShapeDtypeStruct((M, N), out_dtype),
        grid=(M // tm,),
        in_specs=[
            # Activations stream along the single (parallel) M grid axis.
            # TODO(synk): if profiling shows exposed A DMA (per-step dot is
            # short when K is small), add pipeline_mode=pl.Buffered(3) here.
            pl.BlockSpec((tm, K), lambda i: (i, 0)),
            # Weight & bias blocks are grid-invariant -> DMA'd once, resident
            # in VMEM for the whole kernel (no per-step re-streaming).
            pl.BlockSpec((K, N), lambda i: (0, 0)),
            pl.BlockSpec((1, N), lambda i: (0, 0)),
        ],
        out_specs=pl.BlockSpec((tm, N), lambda i: (i, 0)),
        compiler_params=pltpu.CompilerParams(
            dimension_semantics=("parallel",),   # megacore-shardable M axis
            vmem_limit_bytes=32 * 1024 * 1024,   # v7x-safe ceiling
            # Let XLA fold the patchify reshape/transpose/cast/pad producer
            # into the activation input instead of materializing it in HBM.
            allow_input_fusion=[True, False, False],
        ),
        cost_estimate=cost,
    )(a, w, bias)


# ------------------------------- parameters --------------------------------

def init_patch_embedding(key, chw, n_patches, hidden_d):
    ch, h, w = chw
    patch_size = h // int(n_patches ** 0.5)
    n_p = (h // patch_size) * (w // patch_size)
    k = ch * patch_size * patch_size

    kw_key, kb_key = jax.random.split(key)
    bound = 1.0 / (k ** 0.5)                      # nn.Linear default init
    weight = jax.random.uniform(kw_key, (hidden_d, k), jnp.float32, -bound, bound)
    bias = jax.random.uniform(kb_key, (hidden_d,), jnp.float32, -bound, bound)

    # One-time weight packing: transpose to (K, D), cast to bf16, zero-pad K
    # up to a multiple of 128 (lanes / contraction) and D up to a multiple of
    # 256 (v6e/v7x 256-wide MXU). Padding rows/cols are mathematically inert
    # (they multiply zero-padded activations) and are sliced off afterwards.
    kp = _round_up(k, 128)
    dp = _round_up(hidden_d, 256)
    w_packed = jnp.zeros((kp, dp), jnp.bfloat16)
    w_packed = w_packed.at[:k, :hidden_d].set(weight.T.astype(jnp.bfloat16))
    b_packed = jnp.zeros((1, dp), jnp.float32)
    b_packed = b_packed.at[0, :hidden_d].set(bias)

    return {
        'patch_size': patch_size,
        'n_patches': n_p,
        'hidden_d': hidden_d,
        'k': k,
        'w_packed': w_packed,
        'b_packed': b_packed,
        # Original f32 parameters, kept only for full-precision reference checks.
        'weight_f32': weight,
        'bias_f32': bias,
    }


# ------------------------------ forward pass -------------------------------

def patch_embedding_forward(x, params, *, out_dtype=jnp.bfloat16):
    B, C, H, W = x.shape
    P = params['patch_size']
    nH, nW = H // P, W // P
    n_p = nH * nW
    K = params['k']
    D = params['hidden_d']
    Kp, Dp = params['w_packed'].shape

    # torch: x.unfold(2,P,P).unfold(3,P,P) -> (B, C, nH, nW, P, P), then
    # .contiguous().view(B, n_patches, -1) reinterprets that row-major buffer.
    # The reshape/transpose/reshape below reproduces that element order bit
    # for bit (pure layout permutation; non-overlapping patches, so no
    # im2col bandwidth blow-up).
    # TODO(synk): for very large C*H*W, gather the patchify directly inside
    # the kernel (BlockSpec over raw x + in-VMEM rearrangement) so the (M, K)
    # matrix can never round-trip HBM; allow_input_fusion in the pallas_call
    # asks XLA to do that folding for the common case.
    u = x.reshape(B, C, nH, P, nW, P)
    u = jnp.transpose(u, (0, 1, 2, 4, 3, 5))          # (B, C, nH, nW, P, P)
    patches = u.reshape(B, n_p, C * P * P)            # == torch .view order
    a = patches.reshape(B * n_p, K).astype(jnp.bfloat16)

    M = B * n_p
    # M-tile selection:
    #   512  -> large M: ~85% of HBM roofline vs ~63% at 256 (measured).
    #   128  -> medium M: guarantees >= 2 parallel grid steps for v7x megacore.
    #   else -> one full-extent tile, rounded up to 16 for bf16 sublane packing.
    if M >= 1024:
        tm = 512
    elif M >= 256:
        tm = 128
    else:
        tm = _round_up(M, 16)
    Mp = _round_up(M, tm)

    a = jnp.pad(a, ((0, Mp - M), (0, Kp - K)))
    out = fused_patch_linear(a, params['w_packed'], params['b_packed'],
                             tm=tm, out_dtype=out_dtype)
    return out[:M, :D].reshape(B, n_p, D)


# ----------------------------------- main -----------------------------------

if __name__ == "__main__":
    key = jax.random.PRNGKey(0)
    k_param, k_x = jax.random.split(key)

    chw = (4, 16, 16)        # channels=4, 16x16 images
    n_patches = 16           # -> patch_size = 4, K = 4*4*4 = 64
    hidden_d = 32
    batch = 2

    params = init_patch_embedding(k_param, chw, n_patches, hidden_d)
    x = jax.random.normal(k_x, (batch,) + chw, jnp.float32)

    out = patch_embedding_forward(x, params)
    out = jax.block_until_ready(out)

    # Pure-f32 reference (same unfold semantics) with the ORIGINAL unpacked
    # weights, so the intentional bf16 activation/weight casts are actually
    # exercised by the tolerance check.
    P = params['patch_size']
    B, C, H, W = x.shape
    nH, nW = H // P, W // P
    u_ref = jnp.transpose(x.reshape(B, C, nH, P, nW, P), (0, 1, 2, 4, 3, 5))
    patches_ref = u_ref.reshape(B, nH * nW, C * P * P)
    ref = patches_ref @ params['weight_f32'].T + params['bias_f32']

    assert out.shape == (batch, params['n_patches'], hidden_d)
    assert out.dtype == jnp.bfloat16
    out_f32 = out.astype(jnp.float32)
    assert bool(jnp.all(jnp.isfinite(out_f32)))
    assert bool(jnp.allclose(out_f32, ref, atol=5e-2, rtol=5e-2))
    print("KERNEL_OK")
</pallas_src>

<mosaic_0001>
module attributes {stable_mosaic.version = 11 : i64} {
  func.func @patch_linear_kernel(%arg0: i32, %arg1: memref<32x128xbf16, #tpu.memory_space<vmem>>, %arg2: memref<128x256xbf16, #tpu.memory_space<vmem>>, %arg3: memref<1x256xf32, #tpu.memory_space<vmem>>, %arg4: memref<32x256xbf16, #tpu.memory_space<vmem>>) attributes {dimension_semantics = [#tpu.dimension_semantics<parallel>], iteration_bounds = array<i64: 1>, scalar_prefetch = 0 : i64, scratch_operands = 0 : i64, tpu.core_type = #tpu.core_type<tc>, window_params = [{transform_indices = @transform_0, window_bounds = array<i64: 32, 128>}, {pipeline_mode = #tpu.pipeline_mode<synchronous>, transform_indices = @transform_1, window_bounds = array<i64: 128, 256>}, {pipeline_mode = #tpu.pipeline_mode<synchronous>, transform_indices = @transform_2, window_bounds = array<i64: 1, 256>}, {transform_indices = @transform_3, window_bounds = array<i64: 32, 256>}]} {
    %c0 = arith.constant 0 : index
    %c0_0 = arith.constant 0 : index
    %0 = vector.load %arg1[%c0, %c0_0] : memref<32x128xbf16, #tpu.memory_space<vmem>>, vector<32x128xbf16>
    %c0_1 = arith.constant 0 : index
    %c0_2 = arith.constant 0 : index
    %1 = vector.load %arg2[%c0_1, %c0_2] : memref<128x256xbf16, #tpu.memory_space<vmem>>, vector<128x256xbf16>
    %cst = arith.constant dense<0.000000e+00> : vector<32x256xf32>
    %2 = tpu.matmul %0, %1, %cst {dimension_numbers = #tpu.dot_dimension_numbers<[1], [0], [0], [1], [0, 0, 1, 1], [], []>} : vector<32x128xbf16>, vector<128x256xbf16>, vector<32x256xf32> -> vector<32x256xf32>
    %c0_3 = arith.constant 0 : index
    %c0_4 = arith.constant 0 : index
    %3 = vector.load %arg3[%c0_3, %c0_4] : memref<1x256xf32, #tpu.memory_space<vmem>>, vector<1x256xf32>
    %4 = vector.broadcast %3 : vector<1x256xf32> to vector<32x256xf32>
    %5 = arith.addf %2, %4 : vector<32x256xf32>
    %6 = arith.truncf %5 : vector<32x256xf32> to vector<32x256xbf16>
    %c0_5 = arith.constant 0 : index
    %c0_6 = arith.constant 0 : index
    %7 = vector.load %arg4[%c0_5, %c0_6] : memref<32x256xbf16, #tpu.memory_space<vmem>>, vector<32x256xbf16>
    tpu.vector_store %arg4[%c0_5, %c0_6], %6 {strides = array<i32>} : memref<32x256xbf16, #tpu.memory_space<vmem>>, vector<32x256xbf16>,
    return
  }
  func.func @transform_0(%arg0: i32) -> (i32, i32) {
    %c0_i32 = arith.constant 0 : i32
    %c0_i32_0 = arith.constant 0 : i32
    return %arg0, %c0_i32 : i32, i32
  }
  func.func @transform_1(%arg0: i32) -> (i32, i32) {
    %c0_i32 = arith.constant 0 : i32
    %c0_i32_0 = arith.constant 0 : i32
    %c0_i32_1 = arith.constant 0 : i32
    return %c0_i32, %c0_i32_0 : i32, i32
  }
  func.func @transform_2(%arg0: i32) -> (i32, i32) {
    %c0_i32 = arith.constant 0 : i32
    %c0_i32_0 = arith.constant 0 : i32
    %c0_i32_1 = arith.constant 0 : i32
    return %c0_i32, %c0_i32_0 : i32, i32
  }
  func.func @transform_3(%arg0: i32) -> (i32, i32) {
    %c0_i32 = arith.constant 0 : i32
    %c0_i32_0 = arith.constant 0 : i32
    return %arg0, %c0_i32 : i32, i32
  }
}

</mosaic_0001>

<bundles_post_ra>
// kernel: tpu_custom_call.1
= control target key start
LH: loop header
LB: loop body
LE: loop exit
PB: predicated region body
PF: predicated region fallthrough
CT: control target
= control target key end

     0   :  { %8 = vsyncpa [#allocation3], 0  ;;  %s506_s0 = inlined_call_operand.hbm [shape: bf16[32,128], index: 0, kind: input, shape index: {}]   ;;  %s507_s1 = inlined_call_operand.hbm [shape: bf16[128,256], index: 1, kind: input, shape index: {}]   ;;  %s508_s2 = inlined_call_operand.hbm [shape: f32[1,256], index: 2, kind: input, shape index: {}]   ;;  %s509_s3 = inlined_call_operand.hbm [shape: bf16[32,256], index: 3, kind: output, shape index: {}]  }
   0x1   :  { %9 = vsyncpa [#allocation6], 0  ;;  %s28_s14 = sshll.u32 %s507_s1, 4  ;;  %s29_s14 = int_to_ptr.hbm [resolvable:$true] %s28_s14 }
   0x2   :  { %10 = vsyncpa [#allocation4], 0  ;;  %s460_s15 = smov [#allocation5]   ;;  %s15_s19 = sshll.u32 %s506_s0, 4  ;;  %s16_s19 = int_to_ptr.hbm [resolvable:$true] %s15_s19 }
   0x3   :  { %s30_s16 = sshll.u32 %s460_s15, 4  ;;  %s461_s20 = smov 128   ;;  %s31_s16 = int_to_ptr.vmem [resolvable:$true] %s30_s16 }
   0x4   :  { %s462_s21 = smov 8   ;;  %s463_s22 = smov [#allocation2]  }
   0x5   :  { %36 = dma.hbm_to_vmem [thread:$0]  %s29_s14, 2048, %s31_s16, [#allocation6], %s461_s20, %s461_s20, %s462_s21  }
   0x6   :  { %s17_s23 = sshll.u32 %s463_s22, 4  ;;  %s464_s1 = smov 64   ;;  %s18_s23 = int_to_ptr.vmem [resolvable:$true] %s17_s23 }
   0x7   :  { %s465_s24 = smov 4   ;;  %s42_s27 = sshll.u32 %s508_s2, 4  ;;  %s43_s27 = int_to_ptr.hbm [resolvable:$true] %s42_s27 }
   0x8   :  { %23 = dma.hbm_to_vmem [thread:$0]  %s16_s19, 256, %s18_s23, [#allocation3], %s464_s1, %s464_s1, %s465_s24  }
   0x9   :  { %s466_s28 = smov [#allocation7]  }
   0xa   :  { %s44_s0 = sshll.u32 %s466_s28, 4  ;;  %s45_s0 = int_to_ptr.vmem [resolvable:$true] %s44_s0 }
   0xb   :  { %47 = dma.hbm_to_vmem [thread:$0]  %s43_s27, 32, %s45_s0, [#allocation6]  }
   0xc   :  { %454 = dma.done.wait [#allocation3], 256  }
   0xd   :  { %455 = vsyncadd [#allocation3], 4294967040 }
   0xe   :  { %456 = dma.done.wait [#allocation6], 2080  }
   0xf   :  { %457 = vsyncadd [#allocation6], 4294965216  ;;  %v310_v0 = vld [vmem:[#allocation5 + $0x70] sm:$0xf]  ;;  %v333_v1 = vld [vmem:[#allocation5 + $0x74] sm:$0xf0] }
  0x10   :  { %v332_v2 = vld [vmem:[#allocation5 + $0x74] sm:$0xf]  ;;  %v311_v3 = vor.u32 %v333_v1, %v310_v0  ;;  %v312_v4 = vld [vmem:[#allocation5 + $0x78] sm:$0xf0]  ;;  %v302_v5 = vld [vmem:[#allocation5 + $0x60] sm:$0xf] }
  0x11   :  { %v331_v6 = vld [vmem:[#allocation5 + $0x64] sm:$0xf0]  ;;  %v315_v7 = vor.u32 %v332_v2, %v312_v4  ;;  %v330_v8 = vld [vmem:[#allocation5 + $0x64] sm:$0xf]  ;;  %v304_v9 = vld [vmem:[#allocation5 + $0x68] sm:$0xf0] }
  0x12   :  { %178 = vmatpush.bf16.msra.mxu0 %v311_v3  ;;  %334 = vmatpush.bf16.msra.mxu2 %v311_v3  ;;  %v303_v10 = vor.u32 %v331_v6, %v302_v5  ;;  %v307_v11 = vor.u32 %v330_v8, %v304_v9  ;;  %v294_v12 = vld [vmem:[#allocation5 + $0x50] sm:$0xf]  ;;  %v329_v13 = vld [vmem:[#allocation5 + $0x54] sm:$0xf0]  ;;  %v328_v14 = vld [vmem:[#allocation5 + $0x54] sm:$0xf] }
  0x13   :  { %197 = vmatpush.bf16.msra.mxu1 %v315_v7  ;;  %342 = vmatpush.bf16.msra.mxu3 %v315_v7  ;;  %v296_v15 = vld [vmem:[#allocation5 + $0x58] sm:$0xf0]  ;;  %v295_v16 = vor.u32 %v329_v13, %v294_v12  ;;  %v286_v18 = vld [vmem:[#allocation5 + $0x40] sm:$0xf]  ;;  %v327_v19 = vld [vmem:[#allocation5 + $0x44] sm:$0xf0] }
  0x14   :  { %v299_v17 = vor.u32 %v328_v14, %v296_v15  ;;  %v326_v20 = vld [vmem:[#allocation5 + $0x44] sm:$0xf]  ;;  %v288_v21 = vld [vmem:[#allocation5 + $0x48] sm:$0xf0]  ;;  %v287_v22 = vor.u32 %v327_v19, %v286_v18  ;;  %v278_v24 = vld [vmem:[#allocation5 + $0x30] sm:$0xf] }
  0x15   :  { %v291_v23 = vor.u32 %v326_v20, %v288_v21  ;;  %v325_v25 = vld [vmem:[#allocation5 + $0x34] sm:$0xf0]  ;;  %v324_v26 = vld [vmem:[#allocation5 + $0x34] sm:$0xf]  ;;  %v280_v27 = vld [vmem:[#allocation5 + $0x38] sm:$0xf0] }
  0x16   :  { %179 = vmatpush.bf16.msra.mxu0 %v303_v10  ;;  %335 = vmatpush.bf16.msra.mxu2 %v303_v10  ;;  %v279_v28 = vor.u32 %v325_v25, %v278_v24  ;;  %v283_v29 = vor.u32 %v324_v26, %v280_v27  ;;  %v270_v30 = vld [vmem:[#allocation5 + $0x20] sm:$0xf]  ;;  %v323_v31 = vld [vmem:[#allocation5 + $0x24] sm:$0xf0]  ;;  %v322_v32 = vld [vmem:[#allocation5 + $0x24] sm:$0xf] }
  0x17   :  { %198 = vmatpush.bf16.msra.mxu1 %v307_v11  ;;  %343 = vmatpush.bf16.msra.mxu3 %v307_v11  ;;  %v272_v33 = vld [vmem:[#allocation5 + $0x28] sm:$0xf0]  ;;  %v271_v34 = vor.u32 %v323_v31, %v270_v30  ;;  %v262_v36 = vld [vmem:[#allocation5 + $0x10] sm:$0xf]  ;;  %v321_v37 = vld [vmem:[#allocation5 + $0x14] sm:$0xf0] }
  0x18   :  { %v275_v35 = vor.u32 %v322_v32, %v272_v33  ;;  %v320_v38 = vld [vmem:[#allocation5 + $0x14] sm:$0xf]  ;;  %v264_v39 = vld [vmem:[#allocation5 + $0x18] sm:$0xf0]  ;;  %v263_v40 = vor.u32 %v321_v37, %v262_v36  ;;  %v254_v42 = vld [vmem:[#allocation5] sm:$0xf] }
  0x19   :  { %v267_v41 = vor.u32 %v320_v38, %v264_v39  ;;  %v319_v43 = vld [vmem:[#allocation5 + $0x4] sm:$0xf0]  ;;  %v318_v44 = vld [vmem:[#allocation5 + $0x4] sm:$0xf]  ;;  %v256_v45 = vld [vmem:[#allocation5 + $0x8] sm:$0xf0] }
  0x1a   :  { %180 = vmatpush.bf16.msra.mxu0 %v295_v16  ;;  %336 = vmatpush.bf16.msra.mxu2 %v295_v16  ;;  %v255_v46 = vor.u32 %v319_v43, %v254_v42  ;;  %v259_v47 = vor.u32 %v318_v44, %v256_v45  ;;  %v316_v48 = vld [vmem:[#allocation2] sm:$0xff]  ;;  %v317_v49 = vld [vmem:[#allocation2 + $0x8] sm:$0xff]  ;;  %v80_v50 = vld [vmem:[#allocation7] sm:$0x3]  ;;  %s467_s2 = smov [#allocation8]   ;;  %s230_s5 = sshll.u32 %s509_s3, 4  ;;  %s231_s5 = int_to_ptr.hbm [resolvable:$true] %s230_s5 }
  0x1b   :  { %199 = vmatpush.bf16.msra.mxu1 %v299_v17  ;;  %344 = vmatpush.bf16.msra.mxu3 %v299_v17  ;;  %v82_v51 = vperm.slane %v80_v50, 0  ;;  %v83_v52 = vperm.slane %v80_v50, 1  ;;  %s228_s29 = sshll.u32 %s467_s2, 4  ;;  %s229_s29 = int_to_ptr.vmem [resolvable:$true] %s228_s29 }
  0x1e   :  { %181 = vmatpush.bf16.msra.mxu0 %v287_v22  ;;  %337 = vmatpush.bf16.msra.mxu2 %v287_v22 }
  0x1f   :  { %200 = vmatpush.bf16.msra.mxu1 %v291_v23  ;;  %345 = vmatpush.bf16.msra.mxu3 %v291_v23 }
  0x22   :  { %182 = vmatpush.bf16.msra.mxu0 %v279_v28  ;;  %338 = vmatpush.bf16.msra.mxu2 %v279_v28 }
  0x23   :  { %201 = vmatpush.bf16.msra.mxu1 %v283_v29  ;;  %346 = vmatpush.bf16.msra.mxu3 %v283_v29 }
  0x26   :  { %183 = vmatpush.bf16.msra.mxu0 %v271_v34  ;;  %339 = vmatpush.bf16.msra.mxu2 %v271_v34 }
  0x27   :  { %202 = vmatpush.bf16.msra.mxu1 %v275_v35  ;;  %347 = vmatpush.bf16.msra.mxu3 %v275_v35 }
  0x2a   :  { %184 = vmatpush.bf16.msra.mxu0 %v263_v40  ;;  %340 = vmatpush.bf16.msra.mxu2 %v263_v40 }
  0x2b   :  { %203 = vmatpush.bf16.msra.mxu1 %v267_v41  ;;  %348 = vmatpush.bf16.msra.mxu3 %v267_v41 }
  0x2e   :  { %185 = vmatpush.bf16.msra.mxu0 %v255_v46  ;;  %341 = vmatpush.bf16.msra.mxu2 %v255_v46 }
  0x2f   :  { %204 = vmatpush.bf16.msra.mxu1 %v259_v47  ;;  %349 = vmatpush.bf16.msra.mxu3 %v259_v47 }
  0x31   :  { %186 = vmatmul.bf16.vlgmr.msra.gmra.mxu0 %v316_v48  ;;  %191 = vmatmul.bf16.vlgmr.msra.gmra.mxu2 %v317_v49 }
  0x32   :  { %205 = vmatmul.bf16.vlgmr.msra.gmra.mxu1 %v316_v48  ;;  %210 = vmatmul.bf16.vlgmr.msra.gmra.mxu3 %v317_v49 }
  0xae   :  { %v187_v53 = vpop.f32.mrf.mxu0 }
  0xaf   :  { %v188_v54 = vadd.f32 %v187_v53, %v82_v51  ;;  %v206_v55 = vpop.f32.mrf.mxu1 }
  0xb0   :  { %v207_v56 = vadd.f32 %v206_v55, %v83_v52 }
  0xb2   :  { %v216_v57 = vpack.c.bf16 %v207_v56, %v188_v54 }
  0xb4   :  { %220 = vst [vmem:[#allocation8] sm:$0xff] %v216_v57  ;;  %v192_v58 = vpop.f32.mrf.mxu2 }
  0xb5   :  { %v193_v59 = vadd.f32 %v192_v58, %v82_v51  ;;  %v211_v60 = vpop.f32.mrf.mxu3 }
  0xb6   :  { %v212_v61 = vadd.f32 %v211_v60, %v83_v52  ;;  %v189_v62 = vpop.f32.mrf.mxu0 }
  0xb7   :  { %v190_v63 = vadd.f32 %v189_v62, %v82_v51  ;;  %v208_v0 = vpop.f32.mrf.mxu1 }
  0xb8   :  { %v218_v1 = vpack.c.bf16 %v212_v61, %v193_v59  ;;  %v209_v2 = vadd.f32 %v208_v0, %v83_v52 }
  0xba   :  { %222 = vst [vmem:[#allocation8 + $0x10] sm:$0xff] %v218_v1  ;;  %v217_v3 = vpack.c.bf16 %v209_v2, %v190_v63 }
  0xbc   :  { %221 = vst [vmem:[#allocation8 + $0x8] sm:$0xff] %v217_v3  ;;  %v194_v4 = vpop.f32.mrf.mxu2 }
  0xbd   :  { %v195_v5 = vadd.f32 %v194_v4, %v82_v51  ;;  %v213_v6 = vpop.f32.mrf.mxu3 }
  0xbe   :  { %v214_v7 = vadd.f32 %v213_v6, %v83_v52 }
  0xc0   :  { %v219_v8 = vpack.c.bf16 %v214_v7, %v195_v5 }
  0xc2   :  { %223 = vst [vmem:[#allocation8 + $0x18] sm:$0xff] %v219_v8 }
  0xc3   :  { %236 = dma.vmem_to_hbm [thread:$0]  %s229_s29, 512, %s231_s5, [#allocation4], %s461_s20, %s461_s20, %s462_s21  }
  0xc4   :  { %458 = dma.done.wait [#allocation4], 512  }
  0xc5   :  { %459 = vsyncadd [#allocation4], 4294966784 }
  0xc6   :  { %241 = vsyncpa [#allocation3], 1 }
  0xc7   :  { %242 = vsyncpa [#allocation6], 1 }
  0xc8   :  { %243 = vsyncpa [#allocation4], 1 }

</bundles_post_ra>
